<compile_context>
chip_gen: v7x
topology: tpu7x:2x2x1
jax: 0.10.0
libtpu: 0.0.40
codegen_flags: <defaults>
</compile_context>

<pallas_src>
import functools

import jax
import jax.numpy as jnp
from jax.experimental import pallas as pl
from jax.experimental.pallas import tpu as pltpu

IN_FEATURES = 53
HIDDEN = 300
OUT_FEATURES = 1


def _round_up(n, m):
    return (n + m - 1) // m * m


def mlp_kernel(x_ref, w1_ref, b1_ref, w2_ref, b2_ref, o_ref, *,
               compute_dtype, precision):
    # x:  (TB, 53)  native dtype       w1: (53, 300) pre-transposed, compute_dtype
    # b1: (1, 300)  f32                w2: (1, 300)  f32
    # b2: (1, 1)    f32 in SMEM        o:  (1, 1, TB) lane-dense f32
    tb = x_ref.shape[0]

    # linear1 on the MXU: canonical NN layout, explicit operand precision.
    x = x_ref[...].astype(compute_dtype)                     # data = data.float()
    h = jnp.dot(x, w1_ref[...],
                preferred_element_type=jnp.float32,
                precision=precision)                          # (TB, 300) f32 acc
    h = jnp.maximum(h + b1_ref[...], 0.0)                     # bias + ReLU (VPU)

    # linear2 (300 -> 1): contract HIDDEN with w2 as the LHS so the result is
    # produced lane-dense as (1, TB) -> unmasked full-lane stores, contiguous
    # writeback, tiny output VMEM buffers.
    o = jax.lax.dot_general(
        w2_ref[...], h,
        dimension_numbers=(((1,), (1,)), ((), ())),
        preferred_element_type=jnp.float32,
        precision=precision)                                  # (1, TB)
    o_ref[...] = (o + b2_ref[0, 0]).reshape(o_ref.shape)


def regression_model_forward(x, w1, b1, w2, b2, *, tb_max=4096,
                             compute_dtype=jnp.bfloat16):
    """Forward pass of RegressionModel.

    Args:
      x:  (B, 53)   input features (any float dtype).
      w1: (300, 53) linear1.weight  (PyTorch layout: out, in)
      b1: (300,)    linear1.bias
      w2: (1, 300)  linear2.weight
      b2: (1,)      linear2.bias
      tb_max:        max batch-tile size (rows per grid step).
      compute_dtype: jnp.bfloat16 (fast, 1-pass MXU) or jnp.float32
                     (exact parity with torch .float(), Precision.HIGHEST).
    Returns:
      (B, 1) float32
    """
    B = x.shape[0]
    assert x.shape[1] == IN_FEATURES

    # Batch tile: as large as allowed, multiple of 8 sublanes.
    tb = min(tb_max, _round_up(max(B, 1), 8))
    num_tiles = pl.cdiv(B, tb)

    precision = (jax.lax.Precision.HIGHEST
                 if compute_dtype == jnp.float32
                 else jax.lax.Precision.DEFAULT)

    # Tiny one-time parameter prep on the host (no pass over x).
    w1_k = jnp.asarray(w1, jnp.float32).T.astype(compute_dtype)  # (53, 300)
    b1_k = jnp.asarray(b1, jnp.float32).reshape(1, HIDDEN)       # (1, 300)
    w2_k = jnp.asarray(w2, jnp.float32).reshape(1, HIDDEN)       # (1, 300)
    b2_k = jnp.asarray(b2, jnp.float32).reshape(1, 1)            # (1, 1) scalar

    x_bytes = x.size * x.dtype.itemsize
    param_bytes = (w1_k.size * w1_k.dtype.itemsize
                   + (2 * HIDDEN + 1) * 4)
    cost = pl.CostEstimate(
        flops=2 * B * IN_FEATURES * HIDDEN + 2 * B * HIDDEN * OUT_FEATURES,
        transcendentals=0,
        bytes_accessed=x_bytes + B * OUT_FEATURES * 4 + param_bytes,
    )

    kernel = functools.partial(mlp_kernel, compute_dtype=compute_dtype,
                               precision=precision)

    out = pl.pallas_call(
        kernel,
        out_shape=jax.ShapeDtypeStruct((num_tiles, 1, tb), jnp.float32),
        grid=(num_tiles,),
        in_specs=[
            # x: streamed batch tiles (double-buffered by the pipeline).
            pl.BlockSpec((tb, IN_FEATURES), lambda i: (i, 0)),
            # Weights / biases: constant block index -> VMEM-resident.
            pl.BlockSpec((IN_FEATURES, HIDDEN), lambda i: (0, 0)),   # w1 (53,300)
            pl.BlockSpec((1, HIDDEN), lambda i: (0, 0)),             # b1
            pl.BlockSpec((1, HIDDEN), lambda i: (0, 0)),             # w2
            # b2: single scalar, keep it in SMEM.
            pl.BlockSpec(memory_space=pltpu.MemorySpace.SMEM),       # b2
        ],
        # Lane-dense output slab: one (1, 1, tb) row per grid step.
        out_specs=pl.BlockSpec((1, 1, tb), lambda i: (i, 0, 0)),
        compiler_params=pltpu.CompilerParams(
            dimension_semantics=("parallel",),       # megacore on v7x
            vmem_limit_bytes=48 * 1024 * 1024,       # fits v7x (64 MiB physical)
        ),
        cost_estimate=cost,
    )(x, w1_k, b1_k, w2_k, b2_k)

    # (num_tiles, 1, tb) -> (B, 1); padded tail rows (ragged last tile) sliced off.
    return out.reshape(num_tiles * tb)[:B].reshape(B, OUT_FEATURES)


def init_params(key):
    """Deterministic parameter init (PyTorch-style uniform(-1/sqrt(fan_in), ...))."""
    k1, k2, k3, k4 = jax.random.split(key, 4)
    bound1 = 1.0 / jnp.sqrt(IN_FEATURES)
    bound2 = 1.0 / jnp.sqrt(HIDDEN)
    w1 = jax.random.uniform(k1, (HIDDEN, IN_FEATURES), jnp.float32, -bound1, bound1)
    b1 = jax.random.uniform(k2, (HIDDEN,), jnp.float32, -bound1, bound1)
    w2 = jax.random.uniform(k3, (OUT_FEATURES, HIDDEN), jnp.float32, -bound2, bound2)
    b2 = jax.random.uniform(k4, (OUT_FEATURES,), jnp.float32, -bound2, bound2)
    return w1, b1, w2, b2


if __name__ == "__main__":
    key = jax.random.PRNGKey(0)
    kx, kp = jax.random.split(key)
    w1, b1, w2, b2 = init_params(kp)

    def ref_fwd(x):
        xf = x.astype(jnp.float32)
        h = jnp.maximum(
            jnp.dot(xf, w1.T, precision=jax.lax.Precision.HIGHEST) + b1, 0.0)
        return jnp.dot(h, w2.T, precision=jax.lax.Precision.HIGHEST) + b2

    # Small single-tile case: f32 parity path (matches torch .float()).
    B = 8
    x = jax.random.normal(kx, (B, IN_FEATURES), jnp.float32)
    out = jax.block_until_ready(
        regression_model_forward(x, w1, b1, w2, b2, compute_dtype=jnp.float32))
    assert out.shape == (B, OUT_FEATURES)
    assert jnp.allclose(out, ref_fwd(x), atol=1e-4, rtol=1e-4)

    # Multi-step grid with a ragged final tile: fast bf16-MXU path.
    B2 = 300
    x2 = jax.random.normal(kx, (B2, IN_FEATURES), jnp.float32)
    out2 = jax.block_until_ready(
        regression_model_forward(x2, w1, b1, w2, b2, tb_max=128,
                                 compute_dtype=jnp.bfloat16))
    assert out2.shape == (B2, OUT_FEATURES)
    assert jnp.allclose(out2, ref_fwd(x2), atol=3e-2, rtol=3e-2)

    print("KERNEL_OK")
</pallas_src>

<mosaic_0001>
module attributes {stable_mosaic.version = 11 : i64} {
  func.func @mlp_kernel(%arg0: i32, %arg1: memref<8x53xf32, #tpu.memory_space<vmem>>, %arg2: memref<53x300xf32, #tpu.memory_space<vmem>>, %arg3: memref<1x300xf32, #tpu.memory_space<vmem>>, %arg4: memref<1x300xf32, #tpu.memory_space<vmem>>, %arg5: memref<1x1xf32, #tpu.memory_space<smem>>, %arg6: memref<1x1x8xf32, #tpu.memory_space<vmem>>) attributes {dimension_semantics = [#tpu.dimension_semantics<parallel>], iteration_bounds = array<i64: 1>, scalar_prefetch = 0 : i64, scratch_operands = 0 : i64, tpu.core_type = #tpu.core_type<tc>, window_params = [{transform_indices = @transform_0, window_bounds = array<i64: 8, 53>}, {pipeline_mode = #tpu.pipeline_mode<synchronous>, transform_indices = @transform_1, window_bounds = array<i64: 53, 300>}, {pipeline_mode = #tpu.pipeline_mode<synchronous>, transform_indices = @transform_2, window_bounds = array<i64: 1, 300>}, {pipeline_mode = #tpu.pipeline_mode<synchronous>, transform_indices = @transform_3, window_bounds = array<i64: 1, 300>}, {transform_indices = @transform_4, window_bounds = array<i64: 1, 1>}, {transform_indices = @transform_5, window_bounds = array<i64: 1, 1, 8>}]} {
    %c0 = arith.constant 0 : index
    %c0_0 = arith.constant 0 : index
    %0 = vector.load %arg1[%c0, %c0_0] : memref<8x53xf32, #tpu.memory_space<vmem>>, vector<8x53xf32>
    %c0_1 = arith.constant 0 : index
    %c0_2 = arith.constant 0 : index
    %1 = vector.load %arg2[%c0_1, %c0_2] : memref<53x300xf32, #tpu.memory_space<vmem>>, vector<53x300xf32>
    %cst = arith.constant dense<0.000000e+00> : vector<8x300xf32>
    %2 = tpu.matmul %0, %1, %cst {dimension_numbers = #tpu.dot_dimension_numbers<[1], [0], [0], [1], [0, 0, 1, 1], [], []>, precision = #tpu.contract_precision<fp32>} : vector<8x53xf32>, vector<53x300xf32>, vector<8x300xf32> -> vector<8x300xf32>
    %c0_3 = arith.constant 0 : index
    %c0_4 = arith.constant 0 : index
    %3 = vector.load %arg3[%c0_3, %c0_4] : memref<1x300xf32, #tpu.memory_space<vmem>>, vector<1x300xf32>
    %4 = vector.broadcast %3 : vector<1x300xf32> to vector<8x300xf32>
    %5 = arith.addf %2, %4 : vector<8x300xf32>
    %cst_5 = arith.constant 0.000000e+00 : f32
    %6 = vector.broadcast %cst_5 : f32 to vector<8x300xf32>
    %7 = arith.maximumf %5, %6 : vector<8x300xf32>
    %c0_6 = arith.constant 0 : index
    %c0_7 = arith.constant 0 : index
    %8 = vector.load %arg4[%c0_6, %c0_7] : memref<1x300xf32, #tpu.memory_space<vmem>>, vector<1x300xf32>
    %cst_8 = arith.constant dense<0.000000e+00> : vector<1x8xf32>
    %9 = tpu.matmul %8, %7, %cst_8 {dimension_numbers = #tpu.dot_dimension_numbers<[1], [1], [0], [0], [0, 0, 1, 0], [], []>, precision = #tpu.contract_precision<fp32>} : vector<1x300xf32>, vector<8x300xf32>, vector<1x8xf32> -> vector<1x8xf32>
    %c0_9 = arith.constant 0 : index
    %c0_10 = arith.constant 0 : index
    %10 = memref.load %arg5[%c0_9, %c0_10] : memref<1x1xf32, #tpu.memory_space<smem>>
    %11 = vector.broadcast %10 : f32 to vector<1x8xf32>
    %12 = arith.addf %9, %11 : vector<1x8xf32>
    %13 = vector.shape_cast %12 : vector<1x8xf32> to vector<1x1x8xf32>
    %c0_11 = arith.constant 0 : index
    %c0_12 = arith.constant 0 : index
    %c0_13 = arith.constant 0 : index
    %14 = vector.load %arg6[%c0_11, %c0_12, %c0_13] : memref<1x1x8xf32, #tpu.memory_space<vmem>>, vector<1x1x8xf32>
    tpu.vector_store %arg6[%c0_11, %c0_12, %c0_13], %13 {strides = array<i32>} : memref<1x1x8xf32, #tpu.memory_space<vmem>>, vector<1x1x8xf32>,
    return
  }
  func.func @transform_0(%arg0: i32) -> (i32, i32) {
    %c0_i32 = arith.constant 0 : i32
    %c0_i32_0 = arith.constant 0 : i32
    return %arg0, %c0_i32 : i32, i32
  }
  func.func @transform_1(%arg0: i32) -> (i32, i32) {
    %c0_i32 = arith.constant 0 : i32
    %c0_i32_0 = arith.constant 0 : i32
    %c0_i32_1 = arith.constant 0 : i32
    return %c0_i32, %c0_i32_0 : i32, i32
  }
  func.func @transform_2(%arg0: i32) -> (i32, i32) {
    %c0_i32 = arith.constant 0 : i32
    %c0_i32_0 = arith.constant 0 : i32
    %c0_i32_1 = arith.constant 0 : i32
    return %c0_i32, %c0_i32_0 : i32, i32
  }
  func.func @transform_3(%arg0: i32) -> (i32, i32) {
    %c0_i32 = arith.constant 0 : i32
    %c0_i32_0 = arith.constant 0 : i32
    %c0_i32_1 = arith.constant 0 : i32
    return %c0_i32, %c0_i32_0 : i32, i32
  }
  func.func @transform_4(%arg0: i32) -> (i32, i32) {
    %c0_i32 = arith.constant 0 : i32
    %c0_i32_0 = arith.constant 0 : i32
    %c0_i32_1 = arith.constant 0 : i32
    return %c0_i32, %c0_i32_0 : i32, i32
  }
  func.func @transform_5(%arg0: i32) -> (i32, i32, i32) {
    %c0_i32 = arith.constant 0 : i32
    %c0_i32_0 = arith.constant 0 : i32
    %c0_i32_1 = arith.constant 0 : i32
    return %arg0, %c0_i32, %c0_i32_0 : i32, i32, i32
  }
}

</mosaic_0001>

<bundles_post_ra>
// kernel: tpu_custom_call.1
= control target key start
LH: loop header
LB: loop body
LE: loop exit
PB: predicated region body
PF: predicated region fallthrough
CT: control target
= control target key end

     0   :  { %11 = vsyncpa [#allocation4], 0  ;;  %s3086_s0 = inlined_call_operand.hbm [shape: f32[8,53], index: 0, kind: input, shape index: {}]   ;;  %s3087_s1 = inlined_call_operand.hbm [shape: f32[53,300], index: 1, kind: input, shape index: {}]   ;;  %s3088_s2 = inlined_call_operand.vmem [shape: f32[1,300], index: 2, kind: input, shape index: {}]   ;;  %s3089_s3 = inlined_call_operand.vmem [shape: f32[1,300], index: 3, kind: input, shape index: {}]   ;;  %s3090_s4 = inlined_call_operand.<no memory space> [shape: f32[1,1], index: 4, kind: input, shape index: {}]   ;;  %s3091_s5 = inlined_call_operand.hbm [shape: f32[1,1,8], index: 5, kind: output, shape index: {}]  }
   0x1   :  { %12 = vsyncpa [#allocation7], 0 }
   0x2   :  { %13 = vsyncpa [#allocation5], 0  ;;  %s2653_s18 = smov [#allocation3]   ;;  %s2654_s20 = smov [#allocation6]  }
   0x3   :  { %s20_s19 = sshll.u32 %s2653_s18, 4  ;;  %s29_s21 = sshll.u32 %s2654_s20, 4  ;;  %s21_s19 = int_to_ptr.vmem [resolvable:$true] %s20_s19  ;;  %s2691_s21 = int_to_ptr.vmem [resolvable:$true] %s29_s21 }
   0x4   :  { %s2581_s24 = scalar_lea.hbm %s3086_s0, 128 }
   0x5   :  { %p2582_p0 = scmp.ne.s32.totalorder %s3086_s0, %s2581_s24  ;;  %p2585_p1 = scmp.lt.u32.totalorder %s2581_s24, %s3086_s0 }
   0x7   :  { %p2587_p2 = pnand %p2585_p1, %p2582_p0 }
   0x9   :  { %2590 = shalt.err (!%p2587_p2)
}
   0xa   :  { %s2591_s29 = scalar_lea.vmem %s21_s19, 128  ;;  %p2596_p4 = scmp.lt.s32.totalorder %s21_s19, %s21_s19 }
   0xb   :  { %p2592_p3 = scmp.ne.s32.totalorder %s21_s19, %s2591_s29  ;;  %p2597_p5 = scmp.lt.s32.totalorder %s2591_s29, %s2591_s29 }
   0xd   :  { %p2598_p6 = por %p2597_p5, %p2596_p4 }
   0xf   :  { %p2599_p7 = pnand %p2598_p6, %p2592_p3 }
  0x11   :  { %2602 = shalt.err (!%p2599_p7)
}
  0x12   :  { %23 = dma.hbm_to_vmem [thread:$0]  %s3086_s0, 128, %s21_s19, [#allocation4]  }
  0x13   :  { %s2603_s9 = scalar_lea.hbm %s3087_s1, 2688 }
  0x14   :  { %p2604_p8 = scmp.ne.s32.totalorder %s3087_s1, %s2603_s9  ;;  %p2607_p9 = scmp.lt.u32.totalorder %s2603_s9, %s3087_s1 }
  0x16   :  { %p2609_p10 = pnand %p2607_p9, %p2604_p8 }
  0x18   :  { %2612 = shalt.err (!%p2609_p10)
}
  0x19   :  { %s2613_s14 = scalar_lea.vmem %s2691_s21, 2688  ;;  %p2618_p12 = scmp.lt.s32.totalorder %s2691_s21, %s2691_s21 }
  0x1a   :  { %p2614_p11 = scmp.ne.s32.totalorder %s2691_s21, %s2613_s14  ;;  %p2619_p13 = scmp.lt.s32.totalorder %s2613_s14, %s2613_s14 }
  0x1c   :  { %p2620_p0 = por %p2619_p13, %p2618_p12 }
  0x1e   :  { %p2621_p1 = pnand %p2620_p0, %p2614_p11 }
  0x20   :  { %2624 = shalt.err (!%p2621_p1)
}
  0x21   :  { %s2655_s0 = smov 384   ;;  %s2656_s15 = smov 24  }
  0x22   :  { %35 = dma.hbm_to_vmem [thread:$0]  %s3087_s1, 2688, %s2691_s21, [#allocation7], %s2655_s0, %s2655_s0, %s2656_s15  }
  0x23   :  { %2647 = dma.done.wait [#allocation4], 128  }
  0x24   :  { %2648 = vsyncadd [#allocation4], 4294967168 }
  0x25   :  { %2649 = dma.done.wait [#allocation7], 2688  }
  0x26   :  { %2650 = vsyncadd [#allocation7], 4294964608  ;;  %v2657_v0 = vmov 0.0   ;;  %v50_v1 = vld [vmem:[#allocation6 + $0x8] sm:$0xff]  ;;  %v53_v2 = vld [vmem:[#allocation6 + $0x20] sm:$0xff]  ;;  %vm91_vm0 = vcmask 1044480  }
  0x27   :  { %179 = vmatprep.mubr.f32.mxu1 %v2657_v0  ;;  %425 = vmatprep.mubr.f32.mxu0 %v2657_v0  ;;  %v49_v3 = vld [vmem:[#allocation6] sm:$0xff]  ;;  %v101_v4 = vand.u32 4294901760, %v50_v1  ;;  %v105_v5 = vand.u32 4294901760, %v53_v2  ;;  %v52_v6 = vld [vmem:[#allocation6 + $0x18] sm:$0xff]  ;;  %v59_v9 = vld [vmem:[#allocation6 + $0x50] sm:$0xff]  ;;  %vm87_vm1 = vcmask 433152  }
  0x28   :  { %v103_v7 = vand.u32 4294901760, %v49_v3  ;;  %v56_v8 = vld [vmem:[#allocation6 + $0x38] sm:$0xff]  ;;  %v107_v10 = vand.u32 4294901760, %v52_v6  ;;  %v113_v12 = vand.u32 4294901760, %v59_v9  ;;  %v55_v13 = vld [vmem:[#allocation6 + $0x30] sm:$0xff]  ;;  %v58_v18 = vld [vmem:[#allocation6 + $0x48] sm:$0xff] }
  0x29   :  { %v109_v11 = vand.u32 4294901760, %v56_v8  ;;  %v2724_v14 = vpack.c.bf16 %v105_v5, %v101_v4  ;;  %v2726_v15 = vsub.f32 %v50_v1, %v101_v4  ;;  %v2728_v16 = vsub.f32 %v53_v2, %v105_v5  ;;  %v62_v19 = vld [vmem:[#allocation6 + $0x68] sm:$0xff]  ;;  %v65_v24 = vld [vmem:[#allocation6 + $0x80] sm:$0xff]  ;;  %v64_v30 = vld [vmem:[#allocation6 + $0x78] sm:$0xff]  ;;  %s2660_s21 = smov [#allocation8]  }
  0x2a   :  { %v2730_v17 = vsub.f32 %v49_v3, %v103_v7  ;;  %v2732_v20 = vpack.c.bf16 %v107_v10, %v103_v7  ;;  %v2734_v21 = vsub.f32 %v52_v6, %v107_v10  ;;  %v61_v25 = vld [vmem:[#allocation6 + $0x60] sm:$0xff]  ;;  %v2744_v28 = vsub.f32 %v59_v9, %v113_v12  ;;  %v68_v35 = vld [vmem:[#allocation6 + $0x98] sm:$0x1f]  ;;  %v67_v44 = vld [vmem:[#allocation6 + $0x90] sm:$0x1f]  ;;  %s2199_s22 = sshll.u32 %s2660_s21, 4  ;;  %s2200_s22 = int_to_ptr.vmem [resolvable:$true] %s2199_s22 }
  0x2b   :  { %v2736_v22 = vpack.c.bf16 %v113_v12, %v109_v11  ;;  %v2738_v23 = vsub.f32 %v56_v8, %v109_v11  ;;  %2402 = vmatprep.subr.bf16.mxu1 %v2724_v14  ;;  %v2425_v26 = vpack.c.bf16 %v2728_v16, %v2726_v15  ;;  %v111_v29 = vand.u32 4294901760, %v55_v13  ;;  %v48_v49 = vld [vmem:[#allocation3] sm:$0xff]  ;;  %s2625_s23 = scalar_lea.vmem %s2200_s22, 16  ;;  %s2629_s24 = scalar_lea.vmem %s2200_s22, 32 }
  0x2c   :  { %v199_v27 = vand.u32 4294901760, %v2730_v17  ;;  %2404 = vmatpush1.bf16.msra.mxu1 %v2732_v20  ;;  %v211_v31 = vand.u32 4294901760, %v2734_v21  ;;  %v2427_v32 = vpack.c.bf16 %v2734_v21, %v2730_v17  ;;  %v115_v33 = vand.u32 4294901760, %v58_v18  ;;  %p2626_p2 = scmp.ne.s32.totalorder %s2200_s22, %s2625_s23  ;;  %p2630_p3 = scmp.lt.s32.totalorder %s2200_s22, %s2200_s22 }
  0x2d   :  { %v117_v34 = vand.u32 4294901760, %v62_v19  ;;  %2426 = vmatprep.subr.bf16.mxu0 %v2425_v26  ;;  %2406 = vmatprep.subr.bf16.mxu1 %v2736_v22  ;;  %v2751_v36 = vsub.f32 %v55_v13, %v111_v29  ;;  %v2429_v37 = vpack.c.bf16 %v2744_v28, %v2738_v23  ;;  %v121_v38 = vand.u32 4294901760, %v65_v24  ;;  %p2631_p4 = scmp.lt.s32.totalorder %s2629_s24, %s2625_s23 }
  0x2e   :  { %v119_v39 = vand.u32 4294901760, %v61_v25  ;;  %2428 = vmatpush1.bf16.msra.mxu0 %v2427_v32  ;;  %v2755_v40 = vpack.c.bf16 %v115_v33, %v111_v29  ;;  %v2757_v41 = vsub.f32 %v58_v18, %v115_v33  ;;  %v123_v43 = vand.u32 4294901760, %v64_v30 }
  0x2f   :  { %v2759_v42 = vsub.f32 %v62_v19, %v117_v34  ;;  %2430 = vmatprep.subr.bf16.mxu0 %v2429_v37  ;;  %v2761_v45 = vpack.c.bf16 %v121_v38, %v117_v34  ;;  %v2763_v46 = vsub.f32 %v65_v24, %v121_v38  ;;  %v96_v48 = vsel %vm91_vm0, %v68_v35, 0  ;;  %p2632_p5 = por %p2631_p4, %p2630_p3 }
  0x30   :  { %v2765_v47 = vsub.f32 %v61_v25, %v119_v39  ;;  %2408 = vmatpush1.bf16.msra.mxu1 %v2755_v40  ;;  %v2431_v50 = vpack.c.bf16 %v2757_v41, %v2751_v36  ;;  %v2771_v51 = vpack.c.bf16 %v123_v43, %v119_v39  ;;  %v2773_v52 = vsub.f32 %v64_v30, %v123_v43 }
  0x31   :  { %v2775_v53 = vand.u32 4294901760, %v96_v48  ;;  %2410 = vmatprep.subr.bf16.mxu1 %v2761_v45  ;;  %v2433_v54 = vpack.c.bf16 %v2763_v46, %v2759_v42  ;;  %v93_v55 = vsel %vm91_vm0, %v67_v44, 0  ;;  %v193_v56 = vand.u32 4294901760, %v2726_v15  ;;  %p2633_p6 = pnand %p2632_p5, %p2626_p2 }
  0x32   :  { %v205_v57 = vand.u32 4294901760, %v2728_v16  ;;  %2432 = vmatpush1.bf16.msra.mxu0 %v2431_v50  ;;  %v2435_v58 = vpack.c.bf16 %v2773_v52, %v2765_v47  ;;  %v2785_v59 = vand.u32 4294901760, %v93_v55  ;;  %v89_v61 = vsel %vm87_vm1, %v48_v49, 0 }
  0x33   :  { %v2788_v60 = vsub.f32 %v96_v48, %v2775_v53  ;;  %2434 = vmatprep.subr.bf16.mxu0 %v2433_v54  ;;  %v194_v62 = vsub.f32 %v2726_v15, %v193_v56  ;;  %v2797_v1 = vand.u32 4294901760, %v89_v61  ;;  %v200_v2 = vsub.f32 %v2730_v17, %v199_v27 }
  0x34   :  { %v206_v63 = vsub.f32 %v2728_v16, %v205_v57  ;;  %2412 = vmatpush1.bf16.msra.mxu1 %v2771_v51  ;;  %v212_v3 = vsub.f32 %v2734_v21, %v211_v31  ;;  %v217_v4 = vand.u32 4294901760, %v2738_v23  ;;  %v229_v5 = vand.u32 4294901760, %v2744_v28 }
  0x35   :  { %126 = vmatprep.subr.mxu1 %v2775_v53  ;;  %v195_v6 = vand.u32 4294901760, %v194_v62  ;;  %v2810_v8 = vsub.f32 %v89_v61, %v2797_v1  ;;  %v201_v9 = vand.u32 4294901760, %v200_v2  ;;  %v2813_v11 = vsub.f32 %v93_v55, %v2785_v59 }
  0x36   :  { %v207_v7 = vand.u32 4294901760, %v206_v63  ;;  %2436 = vmatpush1.bf16.msra.mxu0 %v2435_v58  ;;  %v213_v10 = vand.u32 4294901760, %v212_v3  ;;  %v218_v12 = vsub.f32 %v2738_v23, %v217_v4  ;;  %v230_v13 = vsub.f32 %v2744_v28, %v229_v5 }
  0x37   :  { %371 = vmatprep.subr.mxu0 %v2788_v60  ;;  %v2823_v19 = vand.u32 4294901760, %v2810_v8  ;;  %v223_v24 = vand.u32 4294901760, %v2751_v36  ;;  %v235_v25 = vand.u32 4294901760, %v2757_v41  ;;  %v241_v32 = vand.u32 4294901760, %v2759_v42 }
  0x38   :  { %v2413_v18 = vpack.c.bf16 %v207_v7, %v195_v6  ;;  %128 = vmatpush1.msra.mxu1 %v2785_v59  ;;  %v2415_v26 = vpack.c.bf16 %v213_v10, %v201_v9  ;;  %v219_v29 = vand.u32 4294901760, %v218_v12  ;;  %v231_v30 = vand.u32 4294901760, %v230_v13  ;;  %v51_v12 = vld [vmem:[#allocation6 + $0x10] sm:$0xff]  ;;  %v54_v13 = vld [vmem:[#allocation6 + $0x28] sm:$0xff] }
  0x39   :  { %v183_v33 = vsub.f32 %v2810_v8, %v2823_v19  ;;  %v224_v34 = vsub.f32 %v2751_v36, %v223_v24  ;;  %v236_v35 = vsub.f32 %v2757_v41, %v235_v25  ;;  %v253_v37 = vand.u32 4294901760, %v2763_v46 }
  0x3a   :  { %2414 = vmatprep.subr.bf16.mxu1 %v2413_v18  ;;  %374 = vmatpush1.msra.mxu0 %v2813_v11  ;;  %v2417_v38 = vpack.c.bf16 %v231_v30, %v219_v29  ;;  %v242_v39 = vsub.f32 %v2759_v42, %v241_v32  ;;  %v247_v43 = vand.u32 4294901760, %v2765_v47  ;;  %v259_v44 = vand.u32 4294901760, %v2773_v52  ;;  %v69_v42 = vld [vmem:[#allocation6 + $0xa0] sm:$0x1f] }
  0x3b   :  { %v2844_v48 = vand.u32 4294901760, %v183_v33  ;;  %2438 = vmatprep.subr.bf16.mxu0 %v2724_v14  ;;  %428 = vmatmul.mubr.f32.vlgmr.msra.gmra.mrb[0].mxu0 %v2810_v8  ;;  %v225_v49 = vand.u32 4294901760, %v224_v34  ;;  %v237_v50 = vand.u32 4294901760, %v236_v35  ;;  %v254_v54 = vsub.f32 %v2763_v46, %v253_v37  ;;  %v57_v35 = vld [vmem:[#allocation6 + $0x40] sm:$0xff] }
  0x3c   :  { %2440 = vmatpush1.bf16.msra.mxu0 %v2732_v20  ;;  %v243_v55 = vand.u32 4294901760, %v242_v39  ;;  %v248_v58 = vsub.f32 %v2765_v47, %v247_v43  ;;  %v260_v61 = vsub.f32 %v2773_v52, %v259_v44  ;;  %v265_v62 = vand.u32 4294901760, %v2788_v60  ;;  %512 = vmatprep.mubr.f32.mxu0 %v2657_v0 }
  0x3d   :  { %185 = vmatmul.mubr.f32.vlgmr.msra.gmra.mrb[0].mxu1 %v2844_v48  ;;  %2442 = vmatprep.subr.bf16.mxu0 %v2736_v22  ;;  %v255_v63 = vand.u32 4294901760, %v254_v54  ;;  %v271_v2 = vand.u32 4294901760, %v2813_v11  ;;  %v2419_v3 = vpack.c.bf16 %v237_v50, %v225_v49  ;;  %v723_v30 = vand.u32 4294901760, %v51_v12 }
  0x3e   :  { %2416 = vmatpush1.bf16.msra.mxu1 %v2415_v26  ;;  %v249_v6 = vand.u32 4294901760, %v248_v58  ;;  %v261_v7 = vand.u32 4294901760, %v260_v61  ;;  %325 = vmatprep.mubr.f32.mxu1 %v2657_v0  ;;  %v266_v10 = vsub.f32 %v2788_v60, %v265_v62  ;;  %v726_v33 = vand.u32 4294901760, %v54_v13  ;;  %v66_v58 = vld [vmem:[#allocation6 + $0x88] sm:$0xff] }
  0x3f   :  { %2418 = vmatprep.subr.bf16.mxu1 %v2417_v38  ;;  %v2421_v9 = vpack.c.bf16 %v255_v63, %v243_v55  ;;  %v272_v26 = vsub.f32 %v2813_v11, %v271_v2  ;;  %v2449_v34 = vpack.c.bf16 %v205_v57, %v193_v56  ;;  %v60_v38 = vld [vmem:[#allocation6 + $0x58] sm:$0xff]  ;;  %v2878_v49 = vsub.f32 %v51_v12, %v723_v30  ;;  %v63_v55 = vld [vmem:[#allocation6 + $0x70] sm:$0xff] }
  0x40   :  { %2444 = vmatpush1.bf16.msra.mxu0 %v2755_v40  ;;  %v2423_v18 = vpack.c.bf16 %v261_v7, %v249_v6  ;;  %v267_v29 = vand.u32 4294901760, %v266_v10  ;;  %v2880_v50 = vsub.f32 %v54_v13, %v726_v33  ;;  %v2451_v54 = vpack.c.bf16 %v211_v31, %v199_v27 }
  0x41   :  { %2446 = vmatprep.subr.bf16.mxu0 %v2761_v45  ;;  %v273_v39 = vand.u32 4294901760, %v272_v26  ;;  %v2887_v15 = vpack.c.bf16 %v726_v33, %v723_v30  ;;  %v729_v16 = vand.u32 4294901760, %v57_v35  ;;  %v732_v56 = vand.u32 4294901760, %v60_v38  ;;  %v1249_v33 = vld [vmem:[%s3089_s3] sm:$0x7] }
  0x42   :  { %2420 = vmatpush1.bf16.msra.mxu1 %v2419_v3  ;;  %v2453_v57 = vpack.c.bf16 %v229_v5, %v217_v4  ;;  %v2455_v17 = vpack.c.bf16 %v235_v25, %v223_v24  ;;  %v807_v23 = vand.u32 4294901760, %v2878_v49  ;;  %v814_v28 = vand.u32 4294901760, %v2880_v50 }
  0x43   :  { %2422 = vmatprep.subr.bf16.mxu1 %v2421_v9  ;;  %v2898_v21 = vsub.f32 %v57_v35, %v729_v16  ;;  %v2900_v27 = vsub.f32 %v60_v38, %v732_v56  ;;  %v2658_v31 = vmov 0.0|0.0   ;;  %v735_v4 = vand.u32 4294901760, %v63_v55 }
  0x44   :  { %2448 = vmatpush1.bf16.msra.mxu0 %v2771_v51  ;;  %v738_v36 = vand.u32 4294901760, %v66_v58  ;;  %v2457_v41 = vpack.c.bf16 %v253_v37, %v241_v32  ;;  %v2911_v5 = vpack.c.bf16 %v732_v56, %v729_v16  ;;  %v2459_v61 = vpack.c.bf16 %v259_v44, %v247_v43 }
  0x45   :  { %459 = vmatprep.subr.mxu0 %v2775_v53  ;;  %v2914_v24 = vsub.f32 %v63_v55, %v735_v4  ;;  %vm2659_vm2 = vmmov 0   ;;  %v808_v46 = vsub.f32 %v2878_v49, %v807_v23  ;;  %v815_v32 = vsub.f32 %v2880_v50, %v814_v28 }
  0x46   :  { %2424 = vmatpush1.bf16.msra.mxu1 %v2423_v18  ;;  %v2916_v25 = vsub.f32 %v66_v58, %v738_v36  ;;  %v821_v47 = vand.u32 4294901760, %v2898_v21  ;;  %v828_v52 = vand.u32 4294901760, %v2900_v27  ;;  %v2934_v37 = vpack.c.bf16 %v738_v36, %v735_v4 }
  0x47   :  { %268 = vmatprep.subr.mxu1 %v267_v29  ;;  %v99_v43 = vsel %vm91_vm0, %v69_v42, 0  ;;  %v835_v44 = vand.u32 4294901760, %v2914_v24  ;;  %v809_v3 = vand.u32 4294901760, %v808_v46  ;;  %v816_v6 = vand.u32 4294901760, %v815_v32 }
  0x48   :  { %461 = vmatpush1.msra.mxu0 %v2785_v59  ;;  %v842_v63 = vand.u32 4294901760, %v2916_v25  ;;  %v822_v7 = vsub.f32 %v2898_v21, %v821_v47  ;;  %v829_v9 = vsub.f32 %v2900_v27, %v828_v52  ;;  %v2946_v10 = vand.u32 4294901760, %v99_v43 }
  0x49   :  { %2450 = vmatprep.subr.bf16.mxu0 %v2449_v34  ;;  %516 = vmatmul.mubr.f32.vlgmr.msra.gmra.mrb[0].mxu0 %v2823_v19  ;;  %v836_v13 = vsub.f32 %v2914_v24, %v835_v44  ;;  %v2483_v18 = vpack.c.bf16 %v816_v6, %v809_v3  ;;  %vm1267_vm3 = vcmask 359424   ;;  %vm2191_vm4 = vcmask 57344  }
  0x4a   :  { %274 = vmatpush1.msra.mxu1 %v273_v39  ;;  %2452 = vmatpush1.bf16.msra.mxu0 %v2451_v54  ;;  %v2953_v12 = vsub.f32 %v99_v43, %v2946_v10  ;;  %v823_v26 = vand.u32 4294901760, %v822_v7  ;;  %v830_v29 = vand.u32 4294901760, %v829_v9  ;;  %v843_v60 = vsub.f32 %v2916_v25, %v842_v63 }
  0x4b   :  { %327 = vmatmul.mubr.f32.vlgmr.msra.gmra.mrb[0].mxu1 %v2797_v1  ;;  %2473 = vmatprep.subr.bf16.mxu1 %v2658_v31 }
  0x4c   :  { %2475 = vmatpush3.bf16.msra.mxu1 %v2887_v15  ;;  %2454 = vmatprep.subr.bf16.mxu0 %v2453_v57  ;;  %v2486_v11 = vpack.c.bf16 %v830_v29, %v823_v26  ;;  %v849_v30 = vand.u32 4294901760, %v2953_v12 }
  0x4d   :  { %2476 = vmatprep.subr.bf16.mxu1 %v2658_v31  ;;  %2283 = vmatprep.mubr.msk.f32.mxu1 %vm2659_vm2, %v2657_v0 }
  0x4e   :  { %2456 = vmatpush1.bf16.msra.mxu0 %v2455_v17  ;;  %628 = vmatprep.mubr.f32.mxu0 %v2657_v0 }
  0x4f   :  { %2458 = vmatprep.subr.bf16.mxu0 %v2457_v41 }
  0x50   :  { %2478 = vmatpush3.bf16.msra.mxu1 %v2911_v5 }
  0x51   :  { %2479 = vmatprep.subr.bf16.mxu1 %v2658_v31 }
  0x52   :  { %2460 = vmatpush1.bf16.msra.mxu0 %v2459_v61 }
  0x53   :  { %573 = vmatprep.subr.mxu0 %v265_v62  ;;  %v837_v62 = vand.u32 4294901760, %v836_v13 }
  0x54   :  { %2481 = vmatpush3.bf16.msra.mxu1 %v2934_v37 }
  0x55   :  { %2281 = vmatprep.subr.mxu1 %v2657_v0 }
  0x56   :  { %577 = vmatpush1.msra.mxu0 %v271_v2  ;;  %v844_v2 = vand.u32 4294901760, %v843_v60 }
  0x57   :  { %2462 = vmatprep.subr.bf16.mxu0 %v2724_v14  ;;  %630 = vmatmul.mubr.f32.vlgmr.msra.gmra.mrb[0].mxu0 %v2797_v1 }
  0x58   :  { %2282 = vmatpush3.msra.mxu1 %v2946_v10  ;;  %2464 = vmatpush1.bf16.msra.mxu0 %v2732_v20  ;;  %v2489_v14 = vpack.c.bf16 %v844_v2, %v837_v62  ;;  %v850_v20 = vsub.f32 %v2953_v12, %v849_v30 }
  0x59   :  { %2482 = vmatprep.subr.bf16.mxu1 %v2658_v31  ;;  %2284 = vmatmul.mubr.f32.vlgmr.msra.gmra.mrb[2].mxu1 %v2844_v48 }
  0x5a   :  { %2484 = vmatpush3.bf16.msra.mxu1 %v2483_v18  ;;  %2466 = vmatprep.subr.bf16.mxu0 %v2736_v22  ;;  %v851_v22 = vand.u32 4294901760, %v850_v20 }
  0x5b   :  { %2485 = vmatprep.subr.bf16.mxu1 %v2658_v31  ;;  %2300 = vmatprep.mubr.msk.f32.mxu1 %vm2659_vm2, %v2657_v0 }
  0x5c   :  { %2468 = vmatpush1.bf16.msra.mxu0 %v2755_v40  ;;  %714 = vmatprep.mubr.f32.mxu0 %v2657_v0  ;;  %v2492_v40 = vpack.c.bf16 %v2880_v50, %v2878_v49 }
  0x5d   :  { %2470 = vmatprep.subr.bf16.mxu0 %v2761_v45  ;;  %v2495_v45 = vpack.c.bf16 %v2900_v27, %v2898_v21 }
  0x5e   :  { %2487 = vmatpush3.bf16.msra.mxu1 %v2486_v11 }
  0x5f   :  { %2488 = vmatprep.subr.bf16.mxu1 %v2658_v31 }
  0x60   :  { %2472 = vmatpush1.bf16.msra.mxu0 %v2771_v51  ;;  %v2498_v51 = vpack.c.bf16 %v2916_v25, %v2914_v24 }
  0x61   :  { %661 = vmatprep.subr.mxu0 %v2775_v53  ;;  %v2510_v53 = vpack.c.bf16 %v814_v28, %v807_v23 }
  0x62   :  { %2490 = vmatpush3.bf16.msra.mxu1 %v2489_v14 }
  0x63   :  { %2298 = vmatprep.subr.mxu1 %v2657_v0 }
  0x64   :  { %663 = vmatpush1.msra.mxu0 %v2785_v59  ;;  %v2513_v59 = vpack.c.bf16 %v828_v52, %v821_v47 }
  0x65   :  { %716 = vmatmul.mubr.f32.vlgmr.msra.gmra.mrb[0].mxu0 %v2797_v1 }
  0x66   :  { %2299 = vmatpush3.msra.mxu1 %v851_v22 }
  0x67   :  { %2491 = vmatprep.subr.bf16.mxu1 %v2658_v31  ;;  %2301 = vmatmul.mubr.f32.vlgmr.msra.gmra.mrb[2].mxu1 %v2797_v1 }
  0x68   :  { %2493 = vmatpush3.bf16.msra.mxu1 %v2492_v40  ;;  %2317 = vmatprep.mubr.msk.f32.mxu1 %vm2659_vm2, %v2657_v0 }
  0x69   :  { %2494 = vmatprep.subr.bf16.mxu1 %v2658_v31 }
  0x6c   :  { %2496 = vmatpush3.bf16.msra.mxu1 %v2495_v45 }
  0x6d   :  { %2497 = vmatprep.subr.bf16.mxu1 %v2658_v31 }
  0x70   :  { %2499 = vmatpush3.bf16.msra.mxu1 %v2498_v51  ;;  %v1251_v51 = vstv %s3090_s4 }
  0x71   :  { %2315 = vmatprep.subr.mxu1 %v2657_v0 }
  0x74   :  { %2316 = vmatpush3.msra.mxu1 %v2953_v12 }
  0x75   :  { %2500 = vmatprep.subr.bf16.mxu1 %v2658_v31  ;;  %2318 = vmatmul.mubr.f32.vlgmr.msra.gmra.mrb[2].mxu1 %v2810_v8  ;;  %v2516_v8 = vpack.c.bf16 %v842_v63, %v835_v44 }
  0x76   :  { %2502 = vmatpush3.bf16.msra.mxu1 %v2887_v15  ;;  %2334 = vmatprep.mubr.msk.f32.mxu1 %vm2659_vm2, %v2657_v0 }
  0x77   :  { %2503 = vmatprep.subr.bf16.mxu1 %v2658_v31 }
  0x7a   :  { %2505 = vmatpush3.bf16.msra.mxu1 %v2911_v5 }
  0x7b   :  { %2506 = vmatprep.subr.bf16.mxu1 %v2658_v31 }
  0x7e   :  { %2508 = vmatpush3.bf16.msra.mxu1 %v2934_v37 }
  0x7f   :  { %2332 = vmatprep.subr.mxu1 %v2657_v0 }
  0x82   :  { %2333 = vmatpush3.msra.mxu1 %v2946_v10 }
  0x83   :  { %2509 = vmatprep.subr.bf16.mxu1 %v2658_v31  ;;  %2335 = vmatmul.mubr.f32.vlgmr.msra.gmra.mrb[2].mxu1 %v2823_v19  ;;  %v72_v19 = vlaneseq }
  0x84   :  { %2511 = vmatpush3.bf16.msra.mxu1 %v2510_v53  ;;  %2351 = vmatprep.mubr.msk.f32.mxu1 %vm2659_vm2, %v2657_v0 }
  0x85   :  { %2512 = vmatprep.subr.bf16.mxu1 %v2658_v31  ;;  %v3040_v48 = vshrl.u32 %v72_v19, 7 }
  0x87   :  { %v78_v34 = vsub.s32 1, %v3040_v48  ;;  %v74_v55 = vsub.s32 0, %v3040_v48  ;;  %v82_v6 = vsub.s32 2, %v3040_v48 }
  0x88   :  { %2514 = vmatpush3.bf16.msra.mxu1 %v2513_v59 }
  0x89   :  { %2515 = vmatprep.subr.bf16.mxu1 %v2658_v31  ;;  %v1260_v35 = vrot.slane %v1249_v33, %v78_v34  ;;  %v1256_v58 = vrot.slane %v1249_v33, %v74_v55  ;;  %v1264_v7 = vrot.slane %v1249_v33, %v82_v6 }
  0x8b   :  { %v1339_v38 = vand.u32 4294901760, %v1260_v35  ;;  %v1345_v17 = vand.u32 4294901760, %v1256_v58  ;;  %v1268_v9 = vsel %vm1267_vm3, %v1264_v7, 0 }
  0x8c   :  { %2517 = vmatpush3.bf16.msra.mxu1 %v2516_v8 }
  0x8d   :  { %2349 = vmatprep.subr.mxu1 %v2657_v0  ;;  %v1340_v39 = vsub.f32 %v1260_v35, %v1339_v38  ;;  %v1346_v27 = vsub.f32 %v1256_v58, %v1345_v17 }
  0x8f   :  { %v1341_v49 = vand.u32 4294901760, %v1340_v39 }
  0x90   :  { %2350 = vmatpush3.msra.mxu1 %v849_v30 }
  0x91   :  { %2518 = vmatprep.subr.bf16.mxu1 %v2658_v31  ;;  %2352 = vmatmul.mubr.f32.vlgmr.msra.gmra.mrb[2].mxu1 %v2797_v1  ;;  %v1342_v50 = vsub.f32 %v1340_v39, %v1341_v49 }
  0x92   :  { %2520 = vmatpush3.bf16.msra.mxu1 %v2887_v15  ;;  %2368 = vmatprep.mubr.msk.f32.mxu1 %vm2659_vm2, %v2657_v0 }
  0x93   :  { %2521 = vmatprep.subr.bf16.mxu1 %v2658_v31  ;;  %v1343_v54 = vand.u32 4294901760, %v1342_v50 }
  0x95   :  { %1344 = vmatprep.mubr.f32.mxu0 %v1343_v54 }
  0x96   :  { %2523 = vmatpush3.bf16.msra.mxu1 %v2911_v5 }
  0x97   :  { %2524 = vmatprep.subr.bf16.mxu1 %v2658_v31  ;;  %v1347_v31 = vand.u32 4294901760, %v1346_v27 }
  0x99   :  { %v1348_v25 = vsub.f32 %v1346_v27, %v1347_v31 }
  0x9a   :  { %2526 = vmatpush3.bf16.msra.mxu1 %v2934_v37 }
  0x9b   :  { %2366 = vmatprep.subr.mxu1 %v2657_v0  ;;  %v1349_v47 = vand.u32 4294901760, %v1348_v25 }
  0x9e   :  { %2367 = vmatpush3.msra.mxu1 %v2946_v10  ;;  %v1811_v10 = vand.u32 4294901760, %v1268_v9 }
  0x9f   :  { %2369 = vmatmul.mubr.f32.vlgmr.msra.gmra.mrb[2].mxu1 %v2797_v1  ;;  %v70_v1 = vld [vmem:[%s3088_s2] sm:$0x7] }
  0xa0   :  { %v79_v15 = vrot.slane %v70_v1, %v78_v34  ;;  %v75_v21 = vrot.slane %v70_v1, %v74_v55  ;;  %v1812_v12 = vsub.f32 %v1268_v9, %v1811_v10  ;;  %v83_v13 = vrot.slane %v70_v1, %v82_v6 }
  0xa2   :  { %v1813_v18 = vand.u32 4294901760, %v1812_v12 }
  0xa4   :  { %v1814_v62 = vsub.f32 %v1812_v12, %v1813_v18 }
  0xa6   :  { %v1815_v14 = vand.u32 4294901760, %v1814_v62 }
 0x11e   :  { %v328_v16 = vpop.f32.mrb[0].mxu1 }
 0x11f   :  { %v330_v56 = vpop.f32.mrb[1].mxu1  ;;  %v2527_v23 = vadd.f32 %v328_v16, %v75_v21 }
 0x120   :  { %v2529_v57 = vadd.f32 %v330_v56, %v79_v15 }
 0x138   :  { %v717_v28 = vpop.f32.mrb[0].mxu0 }
 0x139   :  { %v2528_v4 = vadd.f32 %v2527_v23, %v717_v28  ;;  %v719_v36 = vpop.f32.mrb[1].mxu0 }
 0x13a   :  { %v2530_v41 = vadd.f32 %v2529_v57, %v719_v36 }
 0x13b   :  { %v1246_v5 = vmax.f32 %v2528_v4, 0.0 }
 0x13c   :  { %v1247_v24 = vmax.f32 %v2530_v41, 0.0 }
 0x13d   :  { %v1275_v61 = vand.u32 4294901760, %v1246_v5 }
 0x13e   :  { %v1273_v42 = vand.u32 4294901760, %v1247_v24 }
 0x13f   :  { %v1362_v46 = vsub.f32 %v1246_v5, %v1275_v61 }
 0x140   :  { %v1356_v32 = vsub.f32 %v1247_v24, %v1273_v42  ;;  %1274 = vmatprep.subr.mxu0 %v1273_v42 }
 0x141   :  { %v1363_v52 = vand.u32 4294901760, %v1362_v46  ;;  %1276 = vmatpush1.xpose.msra.mxu0 %v1275_v61 }
 0x142   :  { %v1357_v37 = vand.u32 4294901760, %v1356_v32 }
 0x143   :  { %v1364_v43 = vsub.f32 %v1362_v46, %v1363_v52 }
 0x144   :  { %1350 = vmatmul.mubr.f32.vlgmr.msra.gmra.mrb[2].mxu0 %v1349_v47  ;;  %v1358_v44 = vsub.f32 %v1356_v32, %v1357_v37 }
 0x145   :  { %1430 = vmatprep.mubr.f32.mxu0 %v1339_v38  ;;  %v1365_v3 = vand.u32 4294901760, %v1364_v43 }
 0x146   :  { %v1359_v63 = vand.u32 4294901760, %v1358_v44 }
 0x148   :  { %1360 = vmatprep.subr.mxu0 %v1359_v63 }
 0x149   :  { %1366 = vmatpush1.xpose.msra.mxu0 %v1365_v3 }
 0x14a   :  { %1439 = vmatprep.subr.mxu0 %v1356_v32 }
 0x14c   :  { %1432 = vmatmul.mubr.f32.vlgmr.msra.gmra.mrb[2].mxu0 %v1345_v17 }
 0x14d   :  { %1442 = vmatpush1.xpose.msra.mxu0 %v1362_v46  ;;  %1507 = vmatprep.mubr.f32.mxu0 %v1340_v39 }
 0x14e   :  { %1516 = vmatprep.subr.mxu0 %v1273_v42 }
 0x154   :  { %1510 = vmatmul.mubr.f32.vlgmr.msra.gmra.mrb[2].mxu0 %v1346_v27 }
 0x155   :  { %1518 = vmatpush1.xpose.msra.mxu0 %v1275_v61  ;;  %1584 = vmatprep.mubr.f32.mxu0 %v1341_v49 }
 0x156   :  { %1596 = vmatprep.subr.mxu0 %v1357_v37 }
 0x15c   :  { %1588 = vmatmul.mubr.f32.vlgmr.msra.gmra.mrb[2].mxu0 %v1347_v31 }
 0x15d   :  { %1600 = vmatpush1.xpose.msra.mxu0 %v1363_v52  ;;  %1664 = vmatprep.mubr.f32.mxu0 %v1339_v38 }
 0x15e   :  { %1672 = vmatprep.subr.mxu0 %v1273_v42 }
 0x164   :  { %1666 = vmatmul.mubr.f32.vlgmr.msra.gmra.mrb[2].mxu0 %v1345_v17 }
 0x165   :  { %1674 = vmatpush1.xpose.msra.mxu0 %v1275_v61  ;;  %1738 = vmatprep.mubr.f32.mxu0 %v1339_v38 }
 0x166   :  { %2371 = vmatprep.subr.mxu0 %v2657_v0 }
 0x16c   :  { %1740 = vmatmul.mubr.f32.vlgmr.msra.gmra.mrb[2].mxu0 %v1345_v17 }
 0x16d   :  { %2373 = vmatprep.mubr.msk.f32.mxu0 %vm2659_vm2, %v2657_v0 }
 0x172   :  { %v1242_v26 = vpop.f32.mrb[2].mxu1 }
 0x173   :  { %v2531_v29 = vadd.f32 %v1242_v26, %v83_v13  ;;  %v2370_v60 = vpop.f32.mrb[3].mxu1 }
 0x175   :  { %v1248_v11 = vmax.f32 %v2531_v29, 0.0 }
 0x177   :  { %v1271_v2 = vsel %vm1267_vm3, %v1248_v11, 0 }
 0x178   :  { %v1746_v30 = vand.u32 4294901760, %v1271_v2 }
 0x17a   :  { %v1823_v20 = vsub.f32 %v1271_v2, %v1746_v30  ;;  %2372 = vmatpush3.xpose.msra.mxu0 %v1746_v30 }
 0x17b   :  { %2376 = vmatprep.subr.mxu0 %v2657_v0 }
 0x17c   :  { %v1824_v22 = vand.u32 4294901760, %v1823_v20 }
 0x17d   :  { %2374 = vmatmul.mubr.f32.vlgmr.msra.gmra.mrb[2].mxu0 %v1815_v14 }
 0x17e   :  { %v1825_v40 = vsub.f32 %v1823_v20, %v1824_v22  ;;  %2378 = vmatprep.mubr.msk.f32.mxu0 %vm2659_vm2, %v2657_v0 }
 0x180   :  { %v1826_v45 = vand.u32 4294901760, %v1825_v40 }
 0x182   :  { %2377 = vmatpush3.xpose.msra.mxu0 %v1826_v45 }
 0x183   :  { %2381 = vmatprep.subr.mxu0 %v2657_v0 }
 0x185   :  { %2379 = vmatmul.mubr.f32.vlgmr.msra.gmra.mrb[2].mxu0 %v1811_v10 }
 0x186   :  { %2382 = vmatpush3.xpose.msra.mxu0 %v1823_v20  ;;  %2383 = vmatprep.mubr.msk.f32.mxu0 %vm2659_vm2, %v2657_v0 }
 0x187   :  { %2386 = vmatprep.subr.mxu0 %v2657_v0 }
 0x18d   :  { %2384 = vmatmul.mubr.f32.vlgmr.msra.gmra.mrb[2].mxu0 %v1812_v12 }
 0x18e   :  { %2387 = vmatpush3.xpose.msra.mxu0 %v1746_v30  ;;  %2388 = vmatprep.mubr.msk.f32.mxu0 %vm2659_vm2, %v2657_v0 }
 0x18f   :  { %2391 = vmatprep.subr.mxu0 %v2657_v0 }
 0x195   :  { %2389 = vmatmul.mubr.f32.vlgmr.msra.gmra.mrb[2].mxu0 %v1813_v18 }
 0x196   :  { %2392 = vmatpush3.xpose.msra.mxu0 %v1824_v22  ;;  %2393 = vmatprep.mubr.msk.f32.mxu0 %vm2659_vm2, %v2657_v0 }
 0x197   :  { %2396 = vmatprep.subr.mxu0 %v2657_v0 }
 0x19d   :  { %2394 = vmatmul.mubr.f32.vlgmr.msra.gmra.mrb[2].mxu0 %v1811_v10 }
 0x19e   :  { %2397 = vmatpush3.xpose.msra.mxu0 %v1746_v30  ;;  %2398 = vmatprep.mubr.msk.f32.mxu0 %vm2659_vm2, %v2657_v0 }
 0x1a5   :  { %2399 = vmatmul.mubr.f32.vlgmr.msra.gmra.mrb[2].mxu0 %v1811_v10 }
 0x278   :  { %v2187_v53 = vpop.f32.mrb[2].mxu0 }
 0x279   :  { %v2532_v59 = vadd.f32 %v2187_v53, %v1251_v51  ;;  %v2400_v8 = vpop.f32.mrb[3].mxu0 }
 0x27b   :  { %2192 = vst.msk [vmem:[#allocation8] sm:$0x1] %vm2191_vm4, %v2532_v59 }
 0x27c   :  { %2636 = shalt.err (!%p2633_p6)
}
 0x27d   :  { %s2637_s4 = scalar_lea.hbm %s3091_s5, 16 }
 0x27e   :  { %p2638_p7 = scmp.ne.s32.totalorder %s3091_s5, %s2637_s4  ;;  %p2641_p8 = scmp.lt.u32.totalorder %s2637_s4, %s3091_s5 }
 0x280   :  { %p2643_p9 = pnand %p2641_p8, %p2638_p7 }
 0x282   :  { %2646 = shalt.err (!%p2643_p9)
}
 0x283   :  { %2202 = dma.vmem_to_hbm [thread:$0]  %s2200_s22, 16, %s3091_s5, [#allocation5]  }
 0x284   :  { %2651 = dma.done.wait [#allocation5], 16  }
 0x285   :  { %2652 = vsyncadd [#allocation5], 4294967280 }
 0x286   :  { %2206 = vsyncpa [#allocation4], 1 }
 0x287   :  { %2207 = vsyncpa [#allocation7], 1 }
 0x288   :  { %2208 = vsyncpa [#allocation5], 1 }

</bundles_post_ra>
